<compile_context>
chip_gen: v6e
topology: v6e:2x2x1
jax: 0.10.0
libtpu: 0.0.40
codegen_flags: <defaults>
</compile_context>

<pallas_src>
import jax
import jax.numpy as jnp
from jax import lax
from jax.experimental import pallas as pl
from jax.experimental.pallas import tpu as pltpu


def _round_up(n: int, m: int) -> int:
    return ((n + m - 1) // m) * m


def mlp_kernel(x_ref, w1_ref, b1_ref, w2_ref, b2_ref, o_ref):
    # x_ref:  (TM, E)  tile of flattened tokens (native dtype, fed to MXU as-is)
    # w1_ref: (E, H)   fc weight (in x out), VMEM-resident across the grid
    # b1_ref: (1, H)   fc bias
    # w2_ref: (H, E)   proj weight (in x out), VMEM-resident across the grid
    # b2_ref: (1, E)   proj bias
    x = x_ref[...]

    # fc: MXU matmul in native dtype with f32 accumulation, f32 bias add.
    h = jnp.dot(x, w1_ref[...], preferred_element_type=jnp.float32)
    h = h + b1_ref[...].astype(jnp.float32)

    # exact (erf-based) GELU in f32, matching torch.nn.GELU() default.
    h = 0.5 * h * (1.0 + lax.erf(h * jnp.float32(0.7071067811865476)))

    # proj: cast the hidden back to the weight dtype so bf16 weights keep the
    # MXU at full bf16 rate (no-op for the f32 path); f32 accumulation.
    y = jnp.dot(h.astype(w2_ref.dtype), w2_ref[...],
                preferred_element_type=jnp.float32)
    y = y + b2_ref[...].astype(jnp.float32)

    # dropout: identity (eval-mode nn.Dropout).
    # TODO(synk): training-mode dropout would use pltpu.prng_seed + prng_random_bits.
    o_ref[...] = y.astype(o_ref.dtype)


def mlp_pallas(x, w1, b1, w2, b2, *, tile_m=512):
    """x: (B, T, E).  w1: (E, H), b1: (H,), w2: (H, E), b2: (E,)."""
    B, T, E = x.shape
    H = w1.shape[1]
    M = B * T

    # Keep params in the activation dtype (matches a torch module whose
    # parameters share the activation dtype; bf16 params halve VMEM/DMA).
    w1 = w1.astype(x.dtype)
    b1 = b1.astype(x.dtype)
    w2 = w2.astype(x.dtype)
    b2 = b2.astype(x.dtype)

    # Token tile: large and 8-aligned, but never bigger than the (8-aligned)
    # token count. Pad M to a multiple of the tile so arbitrary batch*seq
    # keeps an MXU-friendly tile instead of being forced to a tiny divisor.
    tile_m = max(8, min(tile_m, _round_up(M, 8)))
    M_pad = _round_up(M, tile_m)
    grid_m = M_pad // tile_m

    x2d = x.reshape(M, E)
    if M_pad != M:
        x2d = jnp.pad(x2d, ((0, M_pad - M), (0, 0)))

    b1_2d = b1.reshape(1, H)
    b2_2d = b2.reshape(1, E)

    itemsize = jnp.dtype(x.dtype).itemsize

    # VMEM budget: double-buffered x/out tiles + resident weights/biases +
    # f32 hidden intermediate, with 2x margin, clamped to [32 MiB, 64 MiB]
    # so the request is legal on every generation (v7x has 64 MiB total).
    vmem_needed = itemsize * (
        2 * tile_m * E          # double-buffered x tiles
        + 2 * tile_m * E        # double-buffered out tiles
        + E * H + H * E + H + E # resident weights + biases
    ) + 4 * tile_m * H          # f32 hidden intermediate
    vmem_limit = int(min(max(2 * vmem_needed, 32 * 1024 * 1024),
                         64 * 1024 * 1024))

    cost = pl.CostEstimate(
        flops=4 * M_pad * E * H,                # two matmuls: 2*M*E*H each
        transcendentals=M_pad * H,              # erf per hidden element
        bytes_accessed=(2 * M_pad * E * itemsize          # x in + out
                        + (E * H + H * E + H + E) * itemsize),
    )

    out2d = pl.pallas_call(
        mlp_kernel,
        out_shape=jax.ShapeDtypeStruct((M_pad, E), x.dtype),
        grid_spec=pltpu.PrefetchScalarGridSpec(
            num_scalar_prefetch=0,
            grid=(grid_m,),
            in_specs=[
                pl.BlockSpec((tile_m, E), lambda i: (i, 0)),  # x tile
                pl.BlockSpec((E, H), lambda i: (0, 0)),       # w1 (resident)
                pl.BlockSpec((1, H), lambda i: (0, 0)),       # b1
                pl.BlockSpec((H, E), lambda i: (0, 0)),       # w2 (resident)
                pl.BlockSpec((1, E), lambda i: (0, 0)),       # b2
            ],
            out_specs=pl.BlockSpec((tile_m, E), lambda i: (i, 0)),
        ),
        compiler_params=pltpu.CompilerParams(
            dimension_semantics=("parallel",),
            vmem_limit_bytes=vmem_limit,
        ),
        cost_estimate=cost,
    )(x2d, w1, b1_2d, w2, b2_2d)

    if M_pad != M:
        out2d = out2d[:M]
    return out2d.reshape(B, T, E)


def mlp_reference(x, w1, b1, w2, b2):
    h = jnp.dot(x, w1) + b1
    h = jax.nn.gelu(h, approximate=False)
    return jnp.dot(h, w2) + b2


if __name__ == "__main__":
    # config: embed_dim=32, mlp_ratio=4, mlp_dropout=0.0 (eval-mode identity)
    embed_dim = 32
    mlp_ratio = 4
    hidden = embed_dim * mlp_ratio

    batch, seq = 2, 8

    key = jax.random.PRNGKey(0)
    kx, k1, k2, k3, k4 = jax.random.split(key, 5)

    x = jax.random.normal(kx, (batch, seq, embed_dim), dtype=jnp.float32)

    # Deterministic synthetic parameters (PyTorch Linear: weight (out, in), bias (out,)).
    # We store them pre-transposed as (in, out) for the kernel.
    w1 = (jax.random.normal(k1, (embed_dim, hidden), dtype=jnp.float32)
          * (1.0 / jnp.sqrt(embed_dim)))
    b1 = jax.random.normal(k2, (hidden,), dtype=jnp.float32) * 0.01
    w2 = (jax.random.normal(k3, (hidden, embed_dim), dtype=jnp.float32)
          * (1.0 / jnp.sqrt(hidden)))
    b2 = jax.random.normal(k4, (embed_dim,), dtype=jnp.float32) * 0.01

    out = mlp_pallas(x, w1, b1, w2, b2)
    out = jax.block_until_ready(out)

    ref = mlp_reference(x, w1, b1, w2, b2)
    assert out.shape == (batch, seq, embed_dim)
    assert jnp.allclose(out, ref, atol=1e-5, rtol=1e-5), "mismatch vs reference"

    print("KERNEL_OK")
</pallas_src>

<mosaic_0001>
module attributes {stable_mosaic.version = 11 : i64} {
  func.func @mlp_kernel(%arg0: i32, %arg1: memref<16x32xf32, #tpu.memory_space<vmem>>, %arg2: memref<32x128xf32, #tpu.memory_space<vmem>>, %arg3: memref<1x128xf32, #tpu.memory_space<vmem>>, %arg4: memref<128x32xf32, #tpu.memory_space<vmem>>, %arg5: memref<1x32xf32, #tpu.memory_space<vmem>>, %arg6: memref<16x32xf32, #tpu.memory_space<vmem>>) attributes {dimension_semantics = [#tpu.dimension_semantics<parallel>], iteration_bounds = array<i64: 1>, scalar_prefetch = 0 : i64, scratch_operands = 0 : i64, tpu.core_type = #tpu.core_type<tc>, window_params = [{transform_indices = @transform_0, window_bounds = array<i64: 16, 32>}, {pipeline_mode = #tpu.pipeline_mode<synchronous>, transform_indices = @transform_1, window_bounds = array<i64: 32, 128>}, {pipeline_mode = #tpu.pipeline_mode<synchronous>, transform_indices = @transform_2, window_bounds = array<i64: 1, 128>}, {pipeline_mode = #tpu.pipeline_mode<synchronous>, transform_indices = @transform_3, window_bounds = array<i64: 128, 32>}, {pipeline_mode = #tpu.pipeline_mode<synchronous>, transform_indices = @transform_4, window_bounds = array<i64: 1, 32>}, {transform_indices = @transform_5, window_bounds = array<i64: 16, 32>}]} {
    %c0 = arith.constant 0 : index
    %c0_0 = arith.constant 0 : index
    %0 = vector.load %arg1[%c0, %c0_0] : memref<16x32xf32, #tpu.memory_space<vmem>>, vector<16x32xf32>
    %c0_1 = arith.constant 0 : index
    %c0_2 = arith.constant 0 : index
    %1 = vector.load %arg2[%c0_1, %c0_2] : memref<32x128xf32, #tpu.memory_space<vmem>>, vector<32x128xf32>
    %cst = arith.constant dense<0.000000e+00> : vector<16x128xf32>
    %2 = tpu.matmul %0, %1, %cst {dimension_numbers = #tpu.dot_dimension_numbers<[1], [0], [0], [1], [0, 0, 1, 1], [], []>} : vector<16x32xf32>, vector<32x128xf32>, vector<16x128xf32> -> vector<16x128xf32>
    %c0_3 = arith.constant 0 : index
    %c0_4 = arith.constant 0 : index
    %3 = vector.load %arg3[%c0_3, %c0_4] : memref<1x128xf32, #tpu.memory_space<vmem>>, vector<1x128xf32>
    %4 = vector.broadcast %3 : vector<1x128xf32> to vector<16x128xf32>
    %5 = arith.addf %2, %4 : vector<16x128xf32>
    %cst_5 = arith.constant 5.000000e-01 : f32
    %6 = vector.broadcast %cst_5 : f32 to vector<16x128xf32>
    %7 = arith.mulf %6, %5 : vector<16x128xf32>
    %cst_6 = arith.constant 0.707106769 : f32
    %8 = vector.broadcast %cst_6 : f32 to vector<16x128xf32>
    %9 = arith.mulf %5, %8 : vector<16x128xf32>
    %10 = math.erf %9 : vector<16x128xf32>
    %cst_7 = arith.constant 1.000000e+00 : f32
    %11 = vector.broadcast %cst_7 : f32 to vector<16x128xf32>
    %12 = arith.addf %11, %10 : vector<16x128xf32>
    %13 = arith.mulf %7, %12 : vector<16x128xf32>
    %c0_8 = arith.constant 0 : index
    %c0_9 = arith.constant 0 : index
    %14 = vector.load %arg4[%c0_8, %c0_9] : memref<128x32xf32, #tpu.memory_space<vmem>>, vector<128x32xf32>
    %cst_10 = arith.constant dense<0.000000e+00> : vector<16x32xf32>
    %15 = tpu.matmul %13, %14, %cst_10 {dimension_numbers = #tpu.dot_dimension_numbers<[1], [0], [0], [1], [0, 0, 1, 1], [], []>} : vector<16x128xf32>, vector<128x32xf32>, vector<16x32xf32> -> vector<16x32xf32>
    %c0_11 = arith.constant 0 : index
    %c0_12 = arith.constant 0 : index
    %16 = vector.load %arg5[%c0_11, %c0_12] : memref<1x32xf32, #tpu.memory_space<vmem>>, vector<1x32xf32>
    %17 = vector.broadcast %16 : vector<1x32xf32> to vector<16x32xf32>
    %18 = arith.addf %15, %17 : vector<16x32xf32>
    %c0_13 = arith.constant 0 : index
    %c0_14 = arith.constant 0 : index
    %19 = vector.load %arg6[%c0_13, %c0_14] : memref<16x32xf32, #tpu.memory_space<vmem>>, vector<16x32xf32>
    tpu.vector_store %arg6[%c0_13, %c0_14], %18 {strides = array<i32>} : memref<16x32xf32, #tpu.memory_space<vmem>>, vector<16x32xf32>,
    return
  }
  func.func @transform_0(%arg0: i32) -> (i32, i32) {
    %c0_i32 = arith.constant 0 : i32
    %c0_i32_0 = arith.constant 0 : i32
    return %arg0, %c0_i32 : i32, i32
  }
  func.func @transform_1(%arg0: i32) -> (i32, i32) {
    %c0_i32 = arith.constant 0 : i32
    %c0_i32_0 = arith.constant 0 : i32
    %c0_i32_1 = arith.constant 0 : i32
    return %c0_i32, %c0_i32_0 : i32, i32
  }
  func.func @transform_2(%arg0: i32) -> (i32, i32) {
    %c0_i32 = arith.constant 0 : i32
    %c0_i32_0 = arith.constant 0 : i32
    %c0_i32_1 = arith.constant 0 : i32
    return %c0_i32, %c0_i32_0 : i32, i32
  }
  func.func @transform_3(%arg0: i32) -> (i32, i32) {
    %c0_i32 = arith.constant 0 : i32
    %c0_i32_0 = arith.constant 0 : i32
    %c0_i32_1 = arith.constant 0 : i32
    return %c0_i32, %c0_i32_0 : i32, i32
  }
  func.func @transform_4(%arg0: i32) -> (i32, i32) {
    %c0_i32 = arith.constant 0 : i32
    %c0_i32_0 = arith.constant 0 : i32
    %c0_i32_1 = arith.constant 0 : i32
    return %c0_i32, %c0_i32_0 : i32, i32
  }
  func.func @transform_5(%arg0: i32) -> (i32, i32) {
    %c0_i32 = arith.constant 0 : i32
    %c0_i32_0 = arith.constant 0 : i32
    return %arg0, %c0_i32 : i32, i32
  }
}

</mosaic_0001>

<bundles_post_ra>
// kernel: tpu_custom_call.1
= control target key start
LH: loop header
LB: loop body
LE: loop exit
PB: predicated region body
PF: predicated region fallthrough
CT: control target
= control target key end

     0   :  { %vm34_vm0 = vcmask 261120   ;;  %s457_s0 = inlined_call_operand.vmem [shape: f32[16,32], index: 0, kind: input, shape index: {}]   ;;  %s458_s1 = inlined_call_operand.vmem [shape: f32[32,128], index: 1, kind: input, shape index: {}]   ;;  %s459_s2 = inlined_call_operand.vmem [shape: f32[1,128], index: 2, kind: input, shape index: {}]   ;;  %s460_s3 = inlined_call_operand.vmem [shape: f32[128,32], index: 3, kind: input, shape index: {}]   ;;  %s461_s4 = inlined_call_operand.vmem [shape: f32[1,32], index: 4, kind: input, shape index: {}]   ;;  %s462_s5 = inlined_call_operand.hbm [shape: f32[16,32], index: 5, kind: output, shape index: {}]  }
   0x1   :  { %v26_v0 = vld [vmem:[%s458_s1 + $0x18] sm:$0xff]  ;;  %v25_v1 = vld [vmem:[%s458_s1 + $0x10] sm:$0xff]  ;;  %v21_v2 = vld [vmem:[%s457_s0] sm:$0xff] }
   0x2   :  { %270 = vmatprep.subr.mxu0 %v26_v0  ;;  %v24_v3 = vld [vmem:[%s458_s1 + $0x8] sm:$0xff]  ;;  %278 = vmatprep.mubr.msk.f32.mxu0 %vm34_vm0, %v21_v2  ;;  %v141_v4 = vld [vmem:[%s460_s3 + $0x78] sm:$0xff]  ;;  %v140_v5 = vld [vmem:[%s460_s3 + $0x70] sm:$0xff] }
   0x3   :  { %271 = vmatpush3.msra.mxu0 %v26_v0  ;;  %281 = vmatprep.subr.mxu1 %v141_v4 }
   0x4   :  { %272 = vmatprep.subr.mxu0 %v25_v1 }
   0x5   :  { %10 = vsyncpa [#allocation3], 0  ;;  %273 = vmatpush3.msra.mxu0 %v25_v1  ;;  %v23_v6 = vld [vmem:[%s458_s1] sm:$0xff]  ;;  %282 = vmatpush3.msra.mxu1 %v141_v4  ;;  %v139_v7 = vld [vmem:[%s460_s3 + $0x68] sm:$0xff]  ;;  %s345_s11 = smov [#allocation2]  }
   0x6   :  { %274 = vmatprep.subr.mxu0 %v24_v3  ;;  %283 = vmatprep.subr.mxu1 %v140_v5  ;;  %v22_v8 = vld [vmem:[%s457_s0 + $0x8] sm:$0xff]  ;;  %v138_v9 = vld [vmem:[%s460_s3 + $0x60] sm:$0xff]  ;;  %v137_v10 = vld [vmem:[%s460_s3 + $0x58] sm:$0xff]  ;;  %s231_s12 = sshll.u32 %s345_s11, 4  ;;  %s232_s12 = int_to_ptr.vmem [resolvable:$true] %s231_s12 }
   0x7   :  { %275 = vmatpush3.msra.mxu0 %v24_v3  ;;  %284 = vmatpush3.msra.mxu1 %v140_v5  ;;  %v136_v11 = vld [vmem:[%s460_s3 + $0x50] sm:$0xff]  ;;  %v135_v12 = vld [vmem:[%s460_s3 + $0x48] sm:$0xff]  ;;  %v134_v13 = vld [vmem:[%s460_s3 + $0x40] sm:$0xff]  ;;  %s323_s13 = scalar_lea.vmem %s232_s12, 256  ;;  %p328_p1 = scmp.lt.s32.totalorder %s232_s12, %s232_s12 }
   0x8   :  { %276 = vmatprep.subr.mxu0 %v23_v6  ;;  %285 = vmatprep.subr.mxu1 %v139_v7  ;;  %v133_v14 = vld [vmem:[%s460_s3 + $0x38] sm:$0xff]  ;;  %v132_v15 = vld [vmem:[%s460_s3 + $0x30] sm:$0xff]  ;;  %v131_v16 = vld [vmem:[%s460_s3 + $0x28] sm:$0xff]  ;;  %p324_p0 = scmp.ne.s32.totalorder %s232_s12, %s323_s13  ;;  %p329_p2 = scmp.lt.s32.totalorder %s323_s13, %s323_s13 }
   0x9   :  { %277 = vmatpush3.msra.mxu0 %v23_v6  ;;  %286 = vmatpush3.msra.mxu1 %v139_v7  ;;  %v130_v17 = vld [vmem:[%s460_s3 + $0x20] sm:$0xff]  ;;  %v129_v18 = vld [vmem:[%s460_s3 + $0x18] sm:$0xff]  ;;  %v128_v19 = vld [vmem:[%s460_s3 + $0x10] sm:$0xff] }
   0xa   :  { %279 = vmatmul.mubr.msk.f32.vlgmr.msra.gmra.mxu0 %vm34_vm0, %v22_v8  ;;  %287 = vmatprep.subr.mxu1 %v138_v9  ;;  %v127_v20 = vld [vmem:[%s460_s3 + $0x8] sm:$0xff]  ;;  %v126_v21 = vld [vmem:[%s460_s3] sm:$0xff]  ;;  %p330_p3 = por %p329_p2, %p328_p1 }
   0xb   :  { %288 = vmatpush3.msra.mxu1 %v138_v9  ;;  %v242_v22 = vld [vmem:[%s459_s2] ss:$0 sm:$0xff] }
   0xc   :  { %289 = vmatprep.subr.mxu1 %v137_v10  ;;  %v245_v37 = vld [vmem:[%s461_s4] ss:$0 sm:$0xff]  ;;  %p331_p4 = pnand %p330_p3, %p324_p0 }
   0xd   :  { %290 = vmatpush3.msra.mxu1 %v137_v10 }
   0xe   :  { %291 = vmatprep.subr.mxu1 %v136_v11 }
   0xf   :  { %292 = vmatpush3.msra.mxu1 %v136_v11 }
  0x10   :  { %293 = vmatprep.subr.mxu1 %v135_v12 }
  0x11   :  { %294 = vmatpush3.msra.mxu1 %v135_v12 }
  0x12   :  { %295 = vmatprep.subr.mxu1 %v134_v13 }
  0x13   :  { %296 = vmatpush3.msra.mxu1 %v134_v13 }
  0x14   :  { %297 = vmatprep.subr.mxu1 %v133_v14 }
  0x15   :  { %298 = vmatpush3.msra.mxu1 %v133_v14 }
  0x16   :  { %299 = vmatprep.subr.mxu1 %v132_v15 }
  0x17   :  { %300 = vmatpush3.msra.mxu1 %v132_v15 }
  0x18   :  { %301 = vmatprep.subr.mxu1 %v131_v16 }
  0x19   :  { %302 = vmatpush3.msra.mxu1 %v131_v16 }
  0x1a   :  { %303 = vmatprep.subr.mxu1 %v130_v17 }
  0x1b   :  { %304 = vmatpush3.msra.mxu1 %v130_v17 }
  0x1c   :  { %305 = vmatprep.subr.mxu1 %v129_v18 }
  0x1d   :  { %306 = vmatpush3.msra.mxu1 %v129_v18 }
  0x1e   :  { %307 = vmatprep.subr.mxu1 %v128_v19 }
  0x1f   :  { %308 = vmatpush3.msra.mxu1 %v128_v19 }
  0x20   :  { %309 = vmatprep.subr.mxu1 %v127_v20 }
  0x21   :  { %310 = vmatpush3.msra.mxu1 %v127_v20 }
  0x22   :  { %311 = vmatprep.subr.mxu1 %v126_v21 }
  0x23   :  { %312 = vmatpush3.msra.mxu1 %v126_v21 }
  0xca   :  { %v280_v23 = vpop.f32.mrf.mxu0 }
  0xcb   :  { %v113_v24 = vadd.f32 %v280_v23, %v242_v22 }
  0xcc   :  { %v107_v25 = vpop.f32.mrf.mxu0 }
  0xcd   :  { %v119_v26 = vmul.f32 0.70710677, %v113_v24  ;;  %v108_v27 = vadd.f32 %v242_v22, %v107_v25  ;;  %v117_v34 = vmul.f32 0.5, %v113_v24 }
  0xcf   :  { %319 = verf.f32 %v119_v26  ;;  %v118_v28 = vmul.f32 0.70710677, %v108_v27  ;;  %v116_v32 = vmul.f32 0.5, %v108_v27 }
  0xd1   :  { %321 = verf.f32 %v118_v28 }
  0xdc   :  { %v320_v29 = vpop.eup %319 }
  0xdd   :  { %v123_v31 = vadd.f32 1.0, %v320_v29 }
  0xde   :  { %v322_v30 = vpop.eup %321 }
  0xdf   :  { %v122_v33 = vadd.f32 1.0, %v322_v30  ;;  %v125_v36 = vmul.f32 %v123_v31, %v117_v34 }
  0xe1   :  { %v124_v35 = vmul.f32 %v122_v33, %v116_v32 }
  0xe3   :  { %313 = vmatprep.mubr.f32.mxu1 %v124_v35 }
  0xe4   :  { %314 = vmatmul.mubr.f32.vlgmr.msra.gmra.mxu1 %v125_v36 }
 0x1a4   :  { %v315_v38 = vpop.f32.mrf.mxu1 }
 0x1a5   :  { %v221_v39 = vadd.f32 %v315_v38, %v245_v37 }
 0x1a6   :  { %v215_v40 = vpop.f32.mrf.mxu1 }
 0x1a7   :  { %225 = vst.msk [vmem:[#allocation2 + $0x8] sm:$0xff] %vm34_vm0, %v221_v39  ;;  %v216_v41 = vadd.f32 %v245_v37, %v215_v40 }
 0x1a9   :  { %224 = vst.msk [vmem:[#allocation2] sm:$0xff] %vm34_vm0, %v216_v41 }
 0x1aa   :  { %334 = shalt.err (!%p331_p4)
}
 0x1ab   :  { %s346_s0 = smov 128   ;;  %s347_s4 = smov 8  }
 0x1ac   :  { %237 = dma.vmem_to_hbm [thread:$0]  %s232_s12, 256, %s462_s5, [#allocation3], %s346_s0, %s346_s0, %s347_s4  }
 0x1ad   :  { %343 = dma.done.wait [#allocation3], 256  }
 0x1ae   :  { %344 = vsyncadd [#allocation3], 4294967040 }
 0x1af   :  { %241 = vsyncpa [#allocation3], 1 }

</bundles_post_ra>
